<compile_context>
chip_gen: v6e
topology: v6e:2x2x1
jax: 0.10.0
libtpu: 0.0.40
codegen_flags: <defaults>
</compile_context>

<pallas_src>
import functools

import jax
import jax.numpy as jnp
from jax import lax
from jax.experimental import pallas as pl
from jax.experimental.pallas import tpu as pltpu

_LANES = 512        # boxes per row on the lane axis (multiple of 128)
_CHUNK_ROWS = 8     # rows per inner compute chunk (one (8,128)-aligned sublane tile)


def _round_up(x, m):
    return (x + m - 1) // m * m


def _cdiv(a, b):
    return -(-a // b)


def _pick_max_block_rows():
    """Rows per grid step: 4 MiB input blocks on v6e/v7x, 2 MiB on v5e."""
    try:
        kind = jax.devices()[0].device_kind.lower()
    except Exception:
        return 256
    if "v5 lite" in kind or "v5e" in kind or "v5litepod" in kind:
        return 256
    return 512


def _smooth_l1(d):
    ad = jnp.abs(d)
    return jnp.where(ad < 1.0, 0.5 * d * d, ad - 0.5)


def _bbox_loss_kernel(n_ref, pred_ref, tgt_ref, out_ref, *,
                      block_rows, w_wh_half, w_iou, log_reg):
    """pred_ref/tgt_ref: (4, block_rows, LANES) planes [x, y, w, h]."""
    n_chunks = block_rows // _CHUNK_ROWS
    block_i = pl.program_id(0)
    n_valid = n_ref[0]
    base0 = block_i * (block_rows * _LANES)

    # Hoisted (loop-invariant) element-index iota for tail masking.
    sub = lax.broadcasted_iota(jnp.int32, (_CHUNK_ROWS, _LANES), 0)
    lane = lax.broadcasted_iota(jnp.int32, (_CHUNK_ROWS, _LANES), 1)
    local_idx = sub * _LANES + lane                                   # (8, LANES)

    def chunk_body(r, acc):
        r0 = pl.multiple_of(r * _CHUNK_ROWS, _CHUNK_ROWS)
        rows = pl.ds(r0, _CHUNK_ROWS)
        px = pred_ref[0, rows, :]
        py = pred_ref[1, rows, :]
        pw = pred_ref[2, rows, :]
        ph = pred_ref[3, rows, :]
        tx = tgt_ref[0, rows, :]
        ty = tgt_ref[1, rows, :]
        tw = tgt_ref[2, rows, :]
        th = tgt_ref[3, rows, :]

        # --- SmoothL1 (beta=1) on (w, h) -------------------------------------
        if log_reg:
            dw = jnp.log1p(pw) - jnp.log1p(tw)
            dh = jnp.log1p(ph) - jnp.log1p(th)
        else:
            dw = pw - tw
            dh = ph - th
        l_wh = _smooth_l1(dw) + _smooth_l1(dh)                        # (8, LANES)

        # --- IoU, xywh convention (ultralytics-style bbox_iou, eps=1e-7) -----
        eps = 1e-7
        hw1, hh1 = pw * 0.5, ph * 0.5
        hw2, hh2 = tw * 0.5, th * 0.5
        inter_w = jnp.maximum(
            jnp.minimum(px + hw1, tx + hw2) - jnp.maximum(px - hw1, tx - hw2), 0.0)
        inter_h = jnp.maximum(
            jnp.minimum(py + hh1, ty + hh2) - jnp.maximum(py - hh1, ty - hh2), 0.0)
        inter = inter_w * inter_h
        union = pw * ph + tw * th - inter + eps
        one_minus_iou = 1.0 - inter / union                           # (8, LANES)

        # weighted per-box contribution (w_wh_half already folds the /2 of the
        # smooth-L1 'mean' over 2*N elements)
        c = w_wh_half * l_wh + w_iou * one_minus_iou

        # --- tail masking: only boxes with global index < n contribute -------
        thr = n_valid - (base0 + r0 * _LANES)
        c = jnp.where(local_idx < thr, c, 0.0)
        return acc + c

    acc = lax.fori_loop(0, n_chunks, chunk_body,
                        jnp.zeros((_CHUNK_ROWS, _LANES), jnp.float32))
    out_ref[0] = acc                                                  # (8, LANES)


def ankerloser_bbox_loss(bbox_pred, target_bboxes, weights=(0.4, 0.2, 0.4), *,
                         log_reg=False, use_rotated_iou=True, reduction="mean"):
    assert reduction == "mean", "only reduction='mean' implemented"
    if len(weights) != 3:
        weights = (0.4, 0.2, 0.4)
    if bbox_pred.shape[-1] == 4:
        use_rotated_iou = False
    # TODO(synk): rotated_bbox_iou / theta branch (5-component boxes) not implemented.
    assert bbox_pred.shape[-1] == 4, "only 4-component (x,y,w,h) boxes supported"

    weight_sum = sum(weights)
    norm_weights = ([float(w / weight_sum) for w in weights]
                    if weight_sum != 1.0 else [float(w) for w in weights])
    w_wh, w_theta, w_iou = norm_weights

    pred = jnp.reshape(bbox_pred, (-1, 4)).astype(jnp.float32)
    tgt = jnp.reshape(target_bboxes, (-1, 4)).astype(jnp.float32)
    n = pred.shape[0]
    if n == 0:
        # matches PyTorch: mean over empty tensors is NaN
        return jnp.asarray(jnp.nan, dtype=jnp.float32)

    # --- tiling ---------------------------------------------------------------
    rows = _cdiv(n, _LANES)
    max_block_rows = _pick_max_block_rows()
    # >=2 grid steps when there is enough work (keeps both v7x TCs busy);
    # harmless on single-TC chips.
    block_rows = max(_CHUNK_ROWS,
                     min(max_block_rows, _round_up(_cdiv(rows, 2), _CHUNK_ROWS)))
    rows_pad = _round_up(rows, block_rows)
    n_pad = rows_pad * _LANES
    num_blocks = rows_pad // block_rows

    # --- single fused layout pass per input: (n,4) -> (4, rows_pad, LANES) -----
    # Pad values are irrelevant (tail is masked in-kernel); zeros keep everything
    # finite (union == eps > 0).
    def to_planes(x):
        xt = x.T                                               # (4, n)
        if n_pad > n:
            xt = jnp.pad(xt, ((0, 0), (0, n_pad - n)))
        return xt.reshape(4, rows_pad, _LANES)                 # zero-copy reshape

    pred_planes = to_planes(pred)
    tgt_planes = to_planes(tgt)
    n_arr = jnp.asarray([n], dtype=jnp.int32)                  # scalar-prefetch operand

    kernel = functools.partial(_bbox_loss_kernel, block_rows=block_rows,
                               w_wh_half=0.5 * w_wh, w_iou=w_iou, log_reg=log_reg)

    in_block_bytes = 4 * block_rows * _LANES * 4               # one input block
    vmem_limit = 2 * 2 * in_block_bytes + (8 << 20)            # 2 inputs, double-buffered

    partials = pl.pallas_call(
        kernel,
        out_shape=jax.ShapeDtypeStruct((num_blocks, _CHUNK_ROWS, _LANES), jnp.float32),
        grid_spec=pltpu.PrefetchScalarGridSpec(
            num_scalar_prefetch=1,
            grid=(num_blocks,),
            in_specs=[
                pl.BlockSpec((4, block_rows, _LANES), lambda i, n_ref: (0, i, 0)),
                pl.BlockSpec((4, block_rows, _LANES), lambda i, n_ref: (0, i, 0)),
            ],
            out_specs=pl.BlockSpec((1, _CHUNK_ROWS, _LANES), lambda i, n_ref: (i, 0, 0)),
        ),
        compiler_params=pltpu.CompilerParams(
            dimension_semantics=("parallel",),
            vmem_limit_bytes=vmem_limit),
    )(n_arr, pred_planes, tgt_planes)

    # Weights are folded per element; theta loss is identically 0 for 4-comp boxes.
    loss = jnp.sum(partials) / jnp.float32(n) + w_theta * 0.0
    return loss


def _reference_loss(bbox_pred, target_bboxes, weights=(0.4, 0.2, 0.4), log_reg=False):
    """Pure-JAX mirror of the PyTorch module (4-component boxes)."""
    ws = sum(weights)
    nw = ([float(w / ws) for w in weights] if ws != 1.0 else [float(w) for w in weights])
    p = jnp.reshape(bbox_pred, (-1, 4)).astype(jnp.float32)
    t = jnp.reshape(target_bboxes, (-1, 4)).astype(jnp.float32)
    pwh, twh = p[:, 2:4], t[:, 2:4]
    if log_reg:
        pwh, twh = jnp.log1p(pwh), jnp.log1p(twh)
    d = pwh - twh
    loss_wh = jnp.mean(jnp.where(jnp.abs(d) < 1.0, 0.5 * d * d, jnp.abs(d) - 0.5))
    eps = 1e-7
    b1x1, b1x2 = p[:, 0] - p[:, 2] * 0.5, p[:, 0] + p[:, 2] * 0.5
    b1y1, b1y2 = p[:, 1] - p[:, 3] * 0.5, p[:, 1] + p[:, 3] * 0.5
    b2x1, b2x2 = t[:, 0] - t[:, 2] * 0.5, t[:, 0] + t[:, 2] * 0.5
    b2y1, b2y2 = t[:, 1] - t[:, 3] * 0.5, t[:, 1] + t[:, 3] * 0.5
    iw = jnp.maximum(jnp.minimum(b1x2, b2x2) - jnp.maximum(b1x1, b2x1), 0.0)
    ih = jnp.maximum(jnp.minimum(b1y2, b2y2) - jnp.maximum(b1y1, b2y1), 0.0)
    inter = iw * ih
    union = p[:, 2] * p[:, 3] + t[:, 2] * t[:, 3] - inter + eps
    loss_iou = jnp.mean(1.0 - inter / union)
    return nw[0] * loss_wh + nw[1] * 0.0 + nw[2] * loss_iou


if __name__ == "__main__":
    # Small deterministic inputs: batch=2, 67 boxes (non-aligned -> exercises the
    # in-kernel tail masking), 4 box params (x, y, w, h).
    key = jax.random.PRNGKey(0)
    k1, k2, k3, k4 = jax.random.split(key, 4)
    B, NB = 2, 67
    xy_p = jax.random.uniform(k1, (B, NB, 2), minval=0.0, maxval=16.0)
    wh_p = jax.random.uniform(k2, (B, NB, 2), minval=0.5, maxval=8.0)
    xy_t = xy_p + jax.random.uniform(k3, (B, NB, 2), minval=-1.0, maxval=1.0)
    wh_t = wh_p + jax.random.uniform(k4, (B, NB, 2), minval=-0.5, maxval=0.5)
    bbox_pred = jnp.concatenate([xy_p, wh_p], axis=-1)               # (2, 67, 4)
    target_bboxes = jnp.concatenate([xy_t, wh_t], axis=-1)           # (2, 67, 4)

    # default path
    loss = ankerloser_bbox_loss(bbox_pred, target_bboxes)
    jax.block_until_ready(loss)
    assert loss.shape == () and jnp.isfinite(loss)
    ref = _reference_loss(bbox_pred, target_bboxes)
    assert jnp.allclose(loss, ref, rtol=1e-4, atol=1e-6), (loss, ref)

    # log_reg path
    loss_lr = ankerloser_bbox_loss(bbox_pred, target_bboxes, log_reg=True)
    jax.block_until_ready(loss_lr)
    ref_lr = _reference_loss(bbox_pred, target_bboxes, log_reg=True)
    assert jnp.allclose(loss_lr, ref_lr, rtol=1e-4, atol=1e-6), (loss_lr, ref_lr)

    print("KERNEL_OK")
</pallas_src>

<mosaic_0001>
module attributes {stable_mosaic.version = 11 : i64} {
  func.func @_bbox_loss_kernel(%arg0: i32, %arg1: memref<1xi32, #tpu.memory_space<smem>>, %arg2: memref<4x8x512xf32, #tpu.memory_space<vmem>>, %arg3: memref<4x8x512xf32, #tpu.memory_space<vmem>>, %arg4: memref<1x8x512xf32, #tpu.memory_space<vmem>>) attributes {dimension_semantics = [#tpu.dimension_semantics<parallel>], iteration_bounds = array<i64: 1>, scalar_prefetch = 1 : i64, scratch_operands = 0 : i64, tpu.core_type = #tpu.core_type<tc>, window_params = [{transform_indices = @transform_0, window_bounds = array<i64: 4, 8, 512>}, {transform_indices = @transform_1, window_bounds = array<i64: 4, 8, 512>}, {transform_indices = @transform_2, window_bounds = array<i64: 1, 8, 512>}]} {
    %c0 = arith.constant 0 : index
    %0 = memref.load %arg1[%c0] : memref<1xi32, #tpu.memory_space<smem>>
    %c4096_i32 = arith.constant 4096 : i32
    %1 = arith.muli %arg0, %c4096_i32 : i32
    %2 = tpu.iota {dimensions = array<i32: 0>} : vector<8x512xi32>
    %3 = tpu.iota {dimensions = array<i32: 1>} : vector<8x512xi32>
    %c512_i32 = arith.constant 512 : i32
    %4 = vector.broadcast %c512_i32 : i32 to vector<8x512xi32>
    %5 = arith.muli %2, %4 : vector<8x512xi32>
    %6 = arith.addi %5, %3 : vector<8x512xi32>
    %cst = arith.constant 0.000000e+00 : f32
    %7 = vector.broadcast %cst : f32 to vector<8x512xf32>
    %c0_i32 = arith.constant 0 : i32
    %c8_i32 = arith.constant 8 : i32
    %8 = arith.muli %c0_i32, %c8_i32 : i32
    %9 = tpu.assume_multiple %8, 8 : i32
    %c0_0 = arith.constant 0 : index
    %10 = arith.index_cast %9 : i32 to index
    %c0_1 = arith.constant 0 : index
    %11 = vector.load %arg2[%c0_0, %10, %c0_1] : memref<4x8x512xf32, #tpu.memory_space<vmem>>, vector<1x8x512xf32>
    %12 = vector.shape_cast %11 : vector<1x8x512xf32> to vector<8x512xf32>
    %c1 = arith.constant 1 : index
    %13 = arith.index_cast %9 : i32 to index
    %c0_2 = arith.constant 0 : index
    %14 = vector.load %arg2[%c1, %13, %c0_2] : memref<4x8x512xf32, #tpu.memory_space<vmem>>, vector<1x8x512xf32>
    %15 = vector.shape_cast %14 : vector<1x8x512xf32> to vector<8x512xf32>
    %c2 = arith.constant 2 : index
    %16 = arith.index_cast %9 : i32 to index
    %c0_3 = arith.constant 0 : index
    %17 = vector.load %arg2[%c2, %16, %c0_3] : memref<4x8x512xf32, #tpu.memory_space<vmem>>, vector<1x8x512xf32>
    %18 = vector.shape_cast %17 : vector<1x8x512xf32> to vector<8x512xf32>
    %c3 = arith.constant 3 : index
    %19 = arith.index_cast %9 : i32 to index
    %c0_4 = arith.constant 0 : index
    %20 = vector.load %arg2[%c3, %19, %c0_4] : memref<4x8x512xf32, #tpu.memory_space<vmem>>, vector<1x8x512xf32>
    %21 = vector.shape_cast %20 : vector<1x8x512xf32> to vector<8x512xf32>
    %c0_5 = arith.constant 0 : index
    %22 = arith.index_cast %9 : i32 to index
    %c0_6 = arith.constant 0 : index
    %23 = vector.load %arg3[%c0_5, %22, %c0_6] : memref<4x8x512xf32, #tpu.memory_space<vmem>>, vector<1x8x512xf32>
    %24 = vector.shape_cast %23 : vector<1x8x512xf32> to vector<8x512xf32>
    %c1_7 = arith.constant 1 : index
    %25 = arith.index_cast %9 : i32 to index
    %c0_8 = arith.constant 0 : index
    %26 = vector.load %arg3[%c1_7, %25, %c0_8] : memref<4x8x512xf32, #tpu.memory_space<vmem>>, vector<1x8x512xf32>
    %27 = vector.shape_cast %26 : vector<1x8x512xf32> to vector<8x512xf32>
    %c2_9 = arith.constant 2 : index
    %28 = arith.index_cast %9 : i32 to index
    %c0_10 = arith.constant 0 : index
    %29 = vector.load %arg3[%c2_9, %28, %c0_10] : memref<4x8x512xf32, #tpu.memory_space<vmem>>, vector<1x8x512xf32>
    %30 = vector.shape_cast %29 : vector<1x8x512xf32> to vector<8x512xf32>
    %c3_11 = arith.constant 3 : index
    %31 = arith.index_cast %9 : i32 to index
    %c0_12 = arith.constant 0 : index
    %32 = vector.load %arg3[%c3_11, %31, %c0_12] : memref<4x8x512xf32, #tpu.memory_space<vmem>>, vector<1x8x512xf32>
    %33 = vector.shape_cast %32 : vector<1x8x512xf32> to vector<8x512xf32>
    %34 = arith.subf %18, %30 : vector<8x512xf32>
    %35 = arith.subf %21, %33 : vector<8x512xf32>
    %36 = math.absf %34 : vector<8x512xf32>
    %cst_13 = arith.constant 1.000000e+00 : f32
    %37 = vector.broadcast %cst_13 : f32 to vector<8x512xf32>
    %38 = arith.cmpf olt, %36, %37 : vector<8x512xf32>
    %cst_14 = arith.constant 5.000000e-01 : f32
    %39 = vector.broadcast %cst_14 : f32 to vector<8x512xf32>
    %40 = arith.mulf %39, %34 : vector<8x512xf32>
    %41 = arith.mulf %40, %34 : vector<8x512xf32>
    %cst_15 = arith.constant 5.000000e-01 : f32
    %42 = vector.broadcast %cst_15 : f32 to vector<8x512xf32>
    %43 = arith.subf %36, %42 : vector<8x512xf32>
    %44 = arith.select %38, %41, %43 : vector<8x512xi1>, vector<8x512xf32>
    %45 = math.absf %35 : vector<8x512xf32>
    %cst_16 = arith.constant 1.000000e+00 : f32
    %46 = vector.broadcast %cst_16 : f32 to vector<8x512xf32>
    %47 = arith.cmpf olt, %45, %46 : vector<8x512xf32>
    %cst_17 = arith.constant 5.000000e-01 : f32
    %48 = vector.broadcast %cst_17 : f32 to vector<8x512xf32>
    %49 = arith.mulf %48, %35 : vector<8x512xf32>
    %50 = arith.mulf %49, %35 : vector<8x512xf32>
    %cst_18 = arith.constant 5.000000e-01 : f32
    %51 = vector.broadcast %cst_18 : f32 to vector<8x512xf32>
    %52 = arith.subf %45, %51 : vector<8x512xf32>
    %53 = arith.select %47, %50, %52 : vector<8x512xi1>, vector<8x512xf32>
    %54 = arith.addf %44, %53 : vector<8x512xf32>
    %cst_19 = arith.constant 5.000000e-01 : f32
    %55 = vector.broadcast %cst_19 : f32 to vector<8x512xf32>
    %56 = arith.mulf %18, %55 : vector<8x512xf32>
    %cst_20 = arith.constant 5.000000e-01 : f32
    %57 = vector.broadcast %cst_20 : f32 to vector<8x512xf32>
    %58 = arith.mulf %21, %57 : vector<8x512xf32>
    %cst_21 = arith.constant 5.000000e-01 : f32
    %59 = vector.broadcast %cst_21 : f32 to vector<8x512xf32>
    %60 = arith.mulf %30, %59 : vector<8x512xf32>
    %cst_22 = arith.constant 5.000000e-01 : f32
    %61 = vector.broadcast %cst_22 : f32 to vector<8x512xf32>
    %62 = arith.mulf %33, %61 : vector<8x512xf32>
    %63 = arith.addf %12, %56 : vector<8x512xf32>
    %64 = arith.addf %24, %60 : vector<8x512xf32>
    %65 = arith.minimumf %63, %64 : vector<8x512xf32>
    %66 = arith.subf %12, %56 : vector<8x512xf32>
    %67 = arith.subf %24, %60 : vector<8x512xf32>
    %68 = arith.maximumf %66, %67 : vector<8x512xf32>
    %69 = arith.subf %65, %68 : vector<8x512xf32>
    %cst_23 = arith.constant 0.000000e+00 : f32
    %70 = vector.broadcast %cst_23 : f32 to vector<8x512xf32>
    %71 = arith.maximumf %69, %70 : vector<8x512xf32>
    %72 = arith.addf %15, %58 : vector<8x512xf32>
    %73 = arith.addf %27, %62 : vector<8x512xf32>
    %74 = arith.minimumf %72, %73 : vector<8x512xf32>
    %75 = arith.subf %15, %58 : vector<8x512xf32>
    %76 = arith.subf %27, %62 : vector<8x512xf32>
    %77 = arith.maximumf %75, %76 : vector<8x512xf32>
    %78 = arith.subf %74, %77 : vector<8x512xf32>
    %cst_24 = arith.constant 0.000000e+00 : f32
    %79 = vector.broadcast %cst_24 : f32 to vector<8x512xf32>
    %80 = arith.maximumf %78, %79 : vector<8x512xf32>
    %81 = arith.mulf %71, %80 : vector<8x512xf32>
    %82 = arith.mulf %18, %21 : vector<8x512xf32>
    %83 = arith.mulf %30, %33 : vector<8x512xf32>
    %84 = arith.addf %82, %83 : vector<8x512xf32>
    %85 = arith.subf %84, %81 : vector<8x512xf32>
    %cst_25 = arith.constant 1.000000e-07 : f32
    %86 = vector.broadcast %cst_25 : f32 to vector<8x512xf32>
    %87 = arith.addf %85, %86 : vector<8x512xf32>
    %88 = arith.divf %81, %87 : vector<8x512xf32>
    %cst_26 = arith.constant 1.000000e+00 : f32
    %89 = vector.broadcast %cst_26 : f32 to vector<8x512xf32>
    %90 = arith.subf %89, %88 : vector<8x512xf32>
    %cst_27 = arith.constant 2.000000e-01 : f32
    %91 = vector.broadcast %cst_27 : f32 to vector<8x512xf32>
    %92 = arith.mulf %91, %54 : vector<8x512xf32>
    %cst_28 = arith.constant 4.000000e-01 : f32
    %93 = vector.broadcast %cst_28 : f32 to vector<8x512xf32>
    %94 = arith.mulf %93, %90 : vector<8x512xf32>
    %95 = arith.addf %92, %94 : vector<8x512xf32>
    %c512_i32_29 = arith.constant 512 : i32
    %96 = arith.muli %9, %c512_i32_29 : i32
    %97 = arith.addi %1, %96 : i32
    %98 = arith.subi %0, %97 : i32
    %99 = vector.broadcast %98 : i32 to vector<8x512xi32>
    %100 = arith.cmpi slt, %6, %99 : vector<8x512xi32>
    %cst_30 = arith.constant 0.000000e+00 : f32
    %101 = vector.broadcast %cst_30 : f32 to vector<8x512xf32>
    %102 = arith.select %100, %95, %101 : vector<8x512xi1>, vector<8x512xf32>
    %103 = arith.addf %7, %102 : vector<8x512xf32>
    %c1_i32 = arith.constant 1 : i32
    %c0_31 = arith.constant 0 : index
    %c0_32 = arith.constant 0 : index
    %c0_33 = arith.constant 0 : index
    %104 = vector.load %arg4[%c0_31, %c0_32, %c0_33] : memref<1x8x512xf32, #tpu.memory_space<vmem>>, vector<1x8x512xf32>
    %105 = vector.shape_cast %104 : vector<1x8x512xf32> to vector<8x512xf32>
    %106 = vector.shape_cast %103 : vector<8x512xf32> to vector<1x8x512xf32>
    tpu.vector_store %arg4[%c0_31, %c0_32, %c0_33], %106 {strides = array<i32>} : memref<1x8x512xf32, #tpu.memory_space<vmem>>, vector<1x8x512xf32>,
    return
  }
  func.func @transform_0(%arg0: i32, %arg1: memref<1xi32, #tpu.memory_space<smem>>) -> (i32, i32, i32) {
    %c0_i32 = arith.constant 0 : i32
    %c0_i32_0 = arith.constant 0 : i32
    %c0_i32_1 = arith.constant 0 : i32
    return %c0_i32, %arg0, %c0_i32_0 : i32, i32, i32
  }
  func.func @transform_1(%arg0: i32, %arg1: memref<1xi32, #tpu.memory_space<smem>>) -> (i32, i32, i32) {
    %c0_i32 = arith.constant 0 : i32
    %c0_i32_0 = arith.constant 0 : i32
    %c0_i32_1 = arith.constant 0 : i32
    return %c0_i32, %arg0, %c0_i32_0 : i32, i32, i32
  }
  func.func @transform_2(%arg0: i32, %arg1: memref<1xi32, #tpu.memory_space<smem>>) -> (i32, i32, i32) {
    %c0_i32 = arith.constant 0 : i32
    %c0_i32_0 = arith.constant 0 : i32
    %c0_i32_1 = arith.constant 0 : i32
    return %arg0, %c0_i32, %c0_i32_0 : i32, i32, i32
  }
}

</mosaic_0001>

<bundles_post_ra>
// kernel: tpu_custom_call.1
= control target key start
LH: loop header
LB: loop body
LE: loop exit
PB: predicated region body
PF: predicated region fallthrough
CT: control target
= control target key end

     0   :  { %9 = vsyncpa [#allocation5], 0  ;;  %s561_s0 = inlined_call_operand.<no memory space> [shape: s32[1], index: 0, kind: input, shape index: {}]   ;;  %s562_s1 = inlined_call_operand.hbm [shape: f32[4,8,512], index: 1, kind: input, shape index: {}]   ;;  %s563_s2 = inlined_call_operand.hbm [shape: f32[4,8,512], index: 2, kind: input, shape index: {}]   ;;  %s564_s3 = inlined_call_operand.hbm [shape: f32[1,8,512], index: 3, kind: output, shape index: {}]  }
   0x1   :  { %10 = vsyncpa [#allocation8], 0 }
   0x2   :  { %11 = vsyncpa [#allocation6], 0  ;;  %s425_s12 = smov [#allocation4]  }
   0x3   :  { %s17_s13 = sshll.u32 %s425_s12, 4  ;;  %s18_s13 = int_to_ptr.vmem [resolvable:$true] %s17_s13 }
   0x4   :  { %s367_s14 = scalar_lea.vmem %s18_s13, 2048  ;;  %p372_p1 = scmp.lt.s32.totalorder %s18_s13, %s18_s13 }
   0x5   :  { %p368_p0 = scmp.ne.s32.totalorder %s18_s13, %s367_s14  ;;  %p373_p2 = scmp.lt.s32.totalorder %s367_s14, %s367_s14 }
   0x7   :  { %p374_p3 = por %p373_p2, %p372_p1 }
   0x9   :  { %p375_p4 = pnand %p374_p3, %p368_p0 }
   0xb   :  { %378 = shalt.err (!%p375_p4)
}
   0xc   :  { %s426_s15 = smov 512   ;;  %s427_s16 = smov 32  }
   0xd   :  { %23 = dma.hbm_to_vmem [thread:$0]  %s562_s1, 2048, %s18_s13, [#allocation5], %s426_s15, %s426_s15, %s427_s16  }
   0xe   :  { %s428_s19 = smov [#allocation7]  }
   0xf   :  { %s29_s20 = sshll.u32 %s428_s19, 4  ;;  %s30_s20 = int_to_ptr.vmem [resolvable:$true] %s29_s20 }
  0x10   :  { %s387_s21 = scalar_lea.vmem %s30_s20, 2048  ;;  %p392_p6 = scmp.lt.s32.totalorder %s30_s20, %s30_s20 }
  0x11   :  { %p388_p5 = scmp.ne.s32.totalorder %s30_s20, %s387_s21  ;;  %p393_p7 = scmp.lt.s32.totalorder %s387_s21, %s387_s21 }
  0x13   :  { %p394_p8 = por %p393_p7, %p392_p6 }
  0x15   :  { %p395_p9 = pnand %p394_p8, %p388_p5 }
  0x17   :  { %398 = shalt.err (!%p395_p9)
}
  0x18   :  { %35 = dma.hbm_to_vmem [thread:$0]  %s563_s2, 2048, %s30_s20, [#allocation8], %s426_s15, %s426_s15, %s427_s16  }
  0x19   :  { %419 = dma.done.wait [#allocation5], 2048  }
  0x1a   :  { %420 = vsyncadd [#allocation5], 4294965248 }
  0x1b   :  { %421 = dma.done.wait [#allocation8], 2048  }
  0x1c   :  { %422 = vsyncadd [#allocation8], 4294965248  ;;  %v73_v0 = vld [vmem:[#allocation4 + $0x40] sm:$0xff]  ;;  %v74_v27 = vld [vmem:[#allocation4 + $0x48] sm:$0xff]  ;;  %v44_v28 = vlaneseq }
  0x1d   :  { %v59_v1 = vld [vmem:[#allocation4] sm:$0xff]  ;;  %v168_v3 = vmul.f32 0.5, %v73_v0  ;;  %v81_v32 = vld [vmem:[#allocation4 + $0x68] sm:$0xff]  ;;  %v169_v36 = vmul.f32 0.5, %v74_v27 }
  0x1e   :  { %v80_v2 = vld [vmem:[#allocation4 + $0x60] sm:$0xff]  ;;  %v99_v35 = vld [vmem:[#allocation7 + $0x48] sm:$0xff]  ;;  %v45_v42 = vshrl.u32 %v44_v28, 7  ;;  %v456_v43 = vand.u32 127, %v44_v28  ;;  %v173_v45 = vmul.f32 0.5, %v81_v32 }
  0x1f   :  { %v66_v4 = vld [vmem:[#allocation4 + $0x20] sm:$0xff]  ;;  %v172_v7 = vmul.f32 0.5, %v80_v2  ;;  %v184_v12 = vadd.f32 %v168_v3, %v59_v1  ;;  %v196_v13 = vsub.f32 %v59_v1, %v168_v3  ;;  %v252_v25 = vmul.f32 %v80_v2, %v73_v0  ;;  %v60_v40 = vld [vmem:[#allocation4 + $0x8] sm:$0xff] }
  0x20   :  { %v98_v5 = vld [vmem:[#allocation7 + $0x40] sm:$0xff]  ;;  %v105_v41 = vld [vmem:[#allocation7 + $0x68] sm:$0xff]  ;;  %v177_v51 = vmul.f32 0.5, %v99_v35  ;;  %v185_v54 = vadd.f32 %v169_v36, %v60_v40  ;;  %v197_v55 = vsub.f32 %v60_v40, %v169_v36  ;;  %v109_v60 = vsub.f32 %v74_v27, %v99_v35 }
  0x21   :  { %v104_v6 = vld [vmem:[#allocation7 + $0x60] sm:$0xff]  ;;  %v176_v10 = vmul.f32 0.5, %v98_v5  ;;  %v216_v14 = vadd.f32 %v172_v7, %v66_v4  ;;  %v228_v15 = vsub.f32 %v66_v4, %v172_v7  ;;  %v108_v20 = vsub.f32 %v73_v0, %v98_v5  ;;  %v87_v44 = vld [vmem:[#allocation7 + $0x8] sm:$0xff]  ;;  %v467_v4 = vld [vmem:[#allocation4 + $0x50] sm:$0xff] }
  0x22   :  { %v86_v8 = vld [vmem:[#allocation7] sm:$0xff]  ;;  %v180_v11 = vmul.f32 0.5, %v104_v6  ;;  %v256_v26 = vmul.f32 %v104_v6, %v98_v5  ;;  %v112_v30 = vsub.f32 %v80_v2, %v104_v6  ;;  %v67_v49 = vld [vmem:[#allocation4 + $0x28] sm:$0xff]  ;;  %v181_v53 = vmul.f32 0.5, %v105_v41 }
  0x23   :  { %v92_v9 = vld [vmem:[#allocation7 + $0x20] sm:$0xff]  ;;  %v188_v16 = vadd.f32 %v176_v10, %v86_v8  ;;  %v200_v17 = vsub.f32 %v86_v8, %v176_v10  ;;  %v116_v33 = vand.u32 2147483647, %v108_v20  ;;  %v124_v37 = vmul.f32 0.5, %v108_v20  ;;  %v93_v50 = vld [vmem:[#allocation7 + $0x28] sm:$0xff] }
  0x24   :  { %v220_v18 = vadd.f32 %v180_v11, %v92_v9  ;;  %v232_v19 = vsub.f32 %v92_v9, %v180_v11  ;;  %v260_v39 = vadd.f32 %v256_v26, %v252_v25  ;;  %v140_v46 = vand.u32 2147483647, %v112_v30  ;;  %v88_v25 = vld [vmem:[#allocation7 + $0x10] sm:$0xff] }
  0x25   :  { %v192_v21 = vmin.f32 %v184_v12, %v188_v16  ;;  %v204_v22 = vmax.f32 %v196_v13, %v200_v17  ;;  %v148_v47 = vmul.f32 0.5, %v112_v30  ;;  %vm460_vm0 = vcmp.lt.f32.partialorder %v116_v33, 1.0  ;;  %v469_v12 = vld [vmem:[#allocation4 + $0x70] sm:$0xff] }
  0x26   :  { %v224_v23 = vmin.f32 %v216_v14, %v220_v18  ;;  %v236_v24 = vmax.f32 %v228_v15, %v232_v19  ;;  %v464_v56 = vmul.f32 %v124_v37, %v108_v20  ;;  %v189_v58 = vadd.f32 %v177_v51, %v87_v44  ;;  %v471_v13 = vld [vmem:[#allocation7 + $0x50] sm:$0xff]  ;;  %v527_v19 = vld [vmem:[#allocation7 + $0x78] sm:$0xff] }
  0x27   :  { %v208_v29 = vsub.f32 %v192_v21, %v204_v22  ;;  %v201_v59 = vsub.f32 %v87_v44, %v177_v51  ;;  %v217_v61 = vadd.f32 %v173_v45, %v67_v49  ;;  %v221_v62 = vadd.f32 %v181_v53, %v93_v50  ;;  %v473_v14 = vld [vmem:[#allocation7 + $0x70] sm:$0xff] }
  0x28   :  { %v240_v31 = vsub.f32 %v224_v23, %v236_v24  ;;  %v229_v63 = vsub.f32 %v67_v49, %v173_v45  ;;  %v193_v1 = vmin.f32 %v185_v54, %v189_v58  ;;  %v233_v3 = vsub.f32 %v93_v50, %v181_v53  ;;  %v61_v23 = vld [vmem:[#allocation4 + $0x10] sm:$0xff] }
  0x29   :  { %v212_v34 = vmax.f32 %v208_v29, 0.0  ;;  %v205_v2 = vmax.f32 %v197_v55, %v201_v59  ;;  %v338_v5 = vadd.f32 -0.5, %v116_v33  ;;  %v113_v6 = vsub.f32 %v81_v32, %v105_v41  ;;  %v68_v33 = vld [vmem:[#allocation4 + $0x30] sm:$0xff] }
  0x2a   :  { %v244_v38 = vmax.f32 %v240_v31, 0.0  ;;  %v225_v7 = vmin.f32 %v217_v61, %v221_v62  ;;  %v253_v8 = vmul.f32 %v81_v32, %v74_v27  ;;  %v237_v10 = vmax.f32 %v229_v63, %v233_v3  ;;  %v503_v61 = vld [vmem:[#allocation4 + $0x58] sm:$0xff] }
  0x2b   :  { %v209_v9 = vsub.f32 %v193_v1, %v205_v2  ;;  %v257_v11 = vmul.f32 %v105_v41, %v99_v35  ;;  %v152_v15 = vmul.f32 %v148_v47, %v112_v30  ;;  %v342_v16 = vadd.f32 -0.5, %v140_v46 }
  0x2c   :  { %v458_v48 = vmul.f32 %v244_v38, %v212_v34  ;;  %v117_v17 = vand.u32 2147483647, %v109_v60  ;;  %v170_v18 = vmul.f32 0.5, %v467_v4  ;;  %vm476_vm1 = vcmp.lt.f32.partialorder %v140_v46, 1.0  ;;  %v94_v34 = vld [vmem:[#allocation7 + $0x30] sm:$0xff] }
  0x2d   :  { %v125_v20 = vmul.f32 0.5, %v109_v60  ;;  %v213_v21 = vmax.f32 %v209_v9, 0.0  ;;  %v241_v22 = vsub.f32 %v225_v7, %v237_v10  ;;  %v480_v24 = vmul.u32 512, %v45_v42  ;;  %v518_v9 = vld [vmem:[#allocation4 + $0x78] sm:$0xff] }
  0x2e   :  { %v264_v57 = vsub.f32 %v260_v39, %v458_v48  ;;  %v174_v26 = vmul.f32 0.5, %v469_v12  ;;  %v178_v27 = vmul.f32 0.5, %v471_v13  ;;  %v182_v28 = vmul.f32 0.5, %v473_v14  ;;  %v520_v10 = vld [vmem:[#allocation7 + $0x58] sm:$0xff] }
  0x2f   :  { %v136_v29 = vsel %vm460_vm0, %v464_v56, %v338_v5  ;;  %v149_v30 = vmul.f32 0.5, %v113_v6  ;;  %v245_v31 = vmax.f32 %v241_v22, 0.0  ;;  %v261_v32 = vadd.f32 %v257_v11, %v253_v8 }
  0x30   :  { %v268_v0 = vadd.f32 1e-07, %v264_v57  ;;  %v160_v35 = vsel %vm476_vm1, %v152_v15, %v342_v16  ;;  %vm490_vm2 = vcmp.lt.f32.partialorder %v117_v17, 1.0  ;;  %v141_v37 = vand.u32 2147483647, %v113_v6 }
  0x31   :  { %v186_v38 = vadd.f32 %v170_v18, %v61_v23  ;;  %v129_v39 = vmul.f32 %v125_v20, %v109_v60  ;;  %v494_v40 = vmul.f32 %v245_v31, %v213_v21  ;;  %v190_v41 = vadd.f32 %v178_v27, %v88_v25 }
  0x32   :  { %351 = vrcp.f32 %v268_v0  ;;  %v198_v42 = vsub.f32 %v61_v23, %v170_v18  ;;  %v339_v44 = vadd.f32 -0.5, %v117_v17  ;;  %v202_v45 = vsub.f32 %v88_v25, %v178_v27  ;;  %v62_v18 = vld [vmem:[#allocation4 + $0x18] sm:$0xff] }
  0x33   :  { %v218_v46 = vadd.f32 %v174_v26, %v68_v33  ;;  %v222_v47 = vadd.f32 %v182_v28, %v94_v34  ;;  %v153_v49 = vmul.f32 %v149_v30, %v113_v6  ;;  %v265_v50 = vsub.f32 %v261_v32, %v494_v40  ;;  %v89_v23 = vld [vmem:[#allocation7 + $0x18] sm:$0xff] }
  0x34   :  { %v194_v51 = vmin.f32 %v186_v38, %v190_v41  ;;  %v230_v52 = vsub.f32 %v68_v33, %v174_v26  ;;  %v343_v53 = vadd.f32 -0.5, %v141_v37  ;;  %v206_v54 = vmax.f32 %v198_v42, %v202_v45  ;;  %v69_v27 = vld [vmem:[#allocation4 + $0x38] sm:$0xff] }
  0x35   :  { %v226_v55 = vmin.f32 %v218_v46, %v222_v47  ;;  %v234_v56 = vsub.f32 %v94_v34, %v182_v28  ;;  %v52_v57 = vadd.s32 %v480_v24, %v456_v43  ;;  %v164_v58 = vadd.f32 %v160_v35, %v136_v29  ;;  %v95_v28 = vld [vmem:[#allocation7 + $0x38] sm:$0xff] }
  0x36   :  { %vm499_vm3 = vcmp.lt.f32.partialorder %v141_v37, 1.0  ;;  %v269_v60 = vadd.f32 1e-07, %v265_v50  ;;  %v210_v62 = vsub.f32 %v194_v51, %v206_v54  ;;  %v254_v0 = vmul.f32 %v469_v12, %v467_v4 }
  0x37   :  { %v238_v63 = vmax.f32 %v230_v52, %v234_v56  ;;  %v258_v1 = vmul.f32 %v473_v14, %v471_v13  ;;  %v512_v2 = vstv %s561_s0  ;;  %v137_v3 = vsel %vm490_vm2, %v129_v39, %v339_v44  ;;  %s429_s0 = smov [#allocation9]  }
  0x38   :  { %353 = vrcp.f32 %v269_v60  ;;  %v161_v6 = vsel %vm499_vm3, %v153_v49, %v343_v53  ;;  %v214_v7 = vmax.f32 %v210_v62, 0.0  ;;  %v171_v11 = vmul.f32 0.5, %v503_v61  ;;  %s322_s24 = sshll.u32 %s429_s0, 4  ;;  %s323_s24 = int_to_ptr.vmem [resolvable:$true] %s322_s24 }
  0x39   :  { %v242_v8 = vsub.f32 %v226_v55, %v238_v63  ;;  %v48_v16 = vadd.s32 128, %v456_v43  ;;  %v110_v17 = vsub.f32 %v467_v4, %v471_v13  ;;  %v284_v20 = vmul.f32 0.2, %v164_v58  ;;  %s399_s25 = scalar_lea.vmem %s323_s24, 512  ;;  %p404_p11 = scmp.lt.s32.totalorder %s323_s24, %s323_s24 }
  0x3a   :  { %vm300_vm4 = vcmp.lt.s32.totalorder %v52_v57, %v512_v2  ;;  %v262_v22 = vadd.f32 %v258_v1, %v254_v0  ;;  %v165_v26 = vadd.f32 %v161_v6, %v137_v3  ;;  %v179_v29 = vmul.f32 0.5, %v520_v10  ;;  %p400_p10 = scmp.ne.s32.totalorder %s323_s24, %s399_s25  ;;  %p405_p12 = scmp.lt.s32.totalorder %s399_s25, %s399_s25 }
  0x3b   :  { %v246_v21 = vmax.f32 %v242_v8, 0.0  ;;  %v114_v4 = vsub.f32 %v469_v12, %v473_v14  ;;  %v183_v30 = vmul.f32 0.5, %v527_v19  ;;  %v187_v31 = vadd.f32 %v171_v11, %v62_v18 }
  0x3c   :  { %v118_v33 = vand.u32 2147483647, %v110_v17  ;;  %v191_v34 = vadd.f32 %v179_v29, %v89_v23  ;;  %v199_v35 = vsub.f32 %v62_v18, %v171_v11  ;;  %v203_v37 = vsub.f32 %v89_v23, %v179_v29  ;;  %p406_p13 = por %p405_p12, %p404_p11 }
  0x3d   :  { %v534_v13 = vmul.f32 %v246_v21, %v214_v7  ;;  %v223_v39 = vadd.f32 %v183_v30, %v95_v28  ;;  %v235_v45 = vsub.f32 %v95_v28, %v183_v30  ;;  %v126_v46 = vmul.f32 0.5, %v110_v17 }
  0x3e   :  { %v195_v42 = vmin.f32 %v187_v31, %v191_v34  ;;  %v207_v14 = vmax.f32 %v199_v35, %v203_v37  ;;  %v255_v51 = vmul.f32 %v518_v9, %v503_v61  ;;  %v259_v52 = vmul.f32 %v527_v19, %v520_v10  ;;  %p407_p0 = pnand %p406_p13, %p400_p10 }
  0x3f   :  { %v352_v5 = vpop.eup %351  ;;  %v266_v36 = vsub.f32 %v262_v22, %v534_v13  ;;  %v142_v53 = vand.u32 2147483647, %v114_v4  ;;  %v150_v54 = vmul.f32 0.5, %v114_v4  ;;  %v53_v59 = vadd.s32 %v480_v24, %v48_v16 }
  0x40   :  { %v273_v15 = vmul.f32 %v352_v5, %v458_v48  ;;  %v175_v48 = vmul.f32 0.5, %v518_v9  ;;  %v211_v55 = vsub.f32 %v195_v42, %v207_v14  ;;  %v285_v62 = vmul.f32 0.2, %v165_v26 }
  0x41   :  { %v270_v12 = vadd.f32 1e-07, %v266_v36  ;;  %v263_v0 = vadd.f32 %v259_v52, %v255_v51  ;;  %v130_v1 = vmul.f32 %v126_v46, %v110_v17  ;;  %v340_v3 = vadd.f32 -0.5, %v118_v33 }
  0x42   :  { %v280_v25 = vsub.f32 1.0, %v273_v15  ;;  %v219_v38 = vadd.f32 %v175_v48, %v69_v27  ;;  %v231_v44 = vsub.f32 %v69_v27, %v175_v48  ;;  %v215_v60 = vmax.f32 %v211_v55, 0.0 }
  0x43   :  { %355 = vrcp.f32 %v270_v12  ;;  %v154_v5 = vmul.f32 %v150_v54, %v114_v4  ;;  %v344_v6 = vadd.f32 -0.5, %v142_v53  ;;  %vm122_vm5 = vcmp.lt.f32.partialorder %v118_v33, 1.0 }
  0x44   :  { %v288_v32 = vmul.f32 0.4, %v280_v25  ;;  %v227_v47 = vmin.f32 %v219_v38, %v223_v39  ;;  %v239_v50 = vmax.f32 %v231_v44, %v235_v45  ;;  %vm146_vm6 = vcmp.lt.f32.partialorder %v142_v53, 1.0 }
  0x45   :  { %v354_v58 = vpop.eup %353  ;;  %v111_v15 = vsub.f32 %v503_v61, %v520_v10  ;;  %vm301_vm7 = vcmp.lt.s32.totalorder %v53_v59, %v512_v2  ;;  %v138_v16 = vsel %vm122_vm5, %v130_v1, %v340_v3  ;;  %v49_v22 = vadd.s32 256, %v456_v43 }
  0x46   :  { %v292_v41 = vadd.f32 %v288_v32, %v284_v20  ;;  %v243_v56 = vsub.f32 %v227_v47, %v239_v50  ;;  %v275_v57 = vmul.f32 %v354_v58, %v494_v40  ;;  %v162_v40 = vsel %vm146_vm6, %v154_v5, %v344_v6 }
  0x47   :  { %v115_v20 = vsub.f32 %v518_v9, %v527_v19  ;;  %v166_v25 = vadd.f32 %v162_v40, %v138_v16  ;;  %v127_v26 = vmul.f32 0.5, %v111_v15  ;;  %v119_v27 = vand.u32 2147483647, %v111_v15 }
  0x48   :  { %v304_v49 = vsel %vm300_vm4, %v292_v41, 0.0  ;;  %v247_v63 = vmax.f32 %v243_v56, 0.0  ;;  %v281_v7 = vsub.f32 1.0, %v275_v57  ;;  %v54_v29 = vadd.s32 %v480_v24, %v49_v22 }
  0x49   :  { %312 = vst [vmem:[#allocation9] sm:$0xff] %v304_v49  ;;  %v143_v28 = vand.u32 2147483647, %v115_v20  ;;  %v151_v61 = vmul.f32 0.5, %v115_v20  ;;  %v286_v4 = vmul.f32 0.2, %v166_v25  ;;  %v131_v30 = vmul.f32 %v127_v26, %v111_v15 }
  0x4a   :  { %v251_v8 = vmul.f32 %v247_v63, %v215_v60  ;;  %v289_v11 = vmul.f32 0.4, %v281_v7  ;;  %v341_v19 = vadd.f32 -0.5, %v119_v27  ;;  %vm123_vm8 = vcmp.lt.f32.partialorder %v119_v27, 1.0 }
  0x4b   :  { %v155_v31 = vmul.f32 %v151_v61, %v115_v20  ;;  %v345_v32 = vadd.f32 -0.5, %v143_v28  ;;  %vm147_vm9 = vcmp.lt.f32.partialorder %v143_v28, 1.0  ;;  %vm302_vm10 = vcmp.lt.s32.totalorder %v54_v29, %v512_v2 }
  0x4c   :  { %v267_v18 = vsub.f32 %v263_v0, %v251_v8  ;;  %v293_v17 = vadd.f32 %v289_v11, %v285_v62  ;;  %v139_v35 = vsel %vm123_vm8, %v131_v30, %v341_v19  ;;  %v50_v38 = vadd.s32 384, %v456_v43 }
  0x4d   :  { %v163_v36 = vsel %vm147_vm9, %v155_v31, %v345_v32 }
  0x4e   :  { %v271_v21 = vadd.f32 1e-07, %v267_v18  ;;  %v305_v23 = vsel %vm301_vm7, %v293_v17, 0.0  ;;  %v55_v42 = vadd.s32 %v480_v24, %v50_v38 }
  0x4f   :  { %313 = vst [vmem:[#allocation9 + $0x8] sm:$0xff] %v305_v23 }
  0x50   :  { %357 = vrcp.f32 %v271_v21  ;;  %v356_v10 = vpop.eup %355  ;;  %vm303_vm11 = vcmp.lt.s32.totalorder %v55_v42, %v512_v2 }
  0x51   :  { %v277_v48 = vmul.f32 %v356_v10, %v534_v13  ;;  %v167_v13 = vadd.f32 %v163_v36, %v139_v35 }
  0x53   :  { %v282_v9 = vsub.f32 1.0, %v277_v48  ;;  %v287_v45 = vmul.f32 0.2, %v167_v13 }
  0x55   :  { %v290_v33 = vmul.f32 0.4, %v282_v9 }
  0x57   :  { %v294_v34 = vadd.f32 %v290_v33, %v286_v4 }
  0x59   :  { %v306_v37 = vsel %vm302_vm10, %v294_v34, 0.0 }
  0x5a   :  { %314 = vst [vmem:[#allocation9 + $0x10] sm:$0xff] %v306_v37 }
  0x5d   :  { %v358_v39 = vpop.eup %357 }
  0x5e   :  { %v279_v41 = vmul.f32 %v358_v39, %v251_v8 }
  0x60   :  { %v283_v44 = vsub.f32 1.0, %v279_v41 }
  0x62   :  { %v291_v46 = vmul.f32 0.4, %v283_v44 }
  0x64   :  { %v295_v12 = vadd.f32 %v291_v46, %v287_v45 }
  0x66   :  { %v307_v14 = vsel %vm303_vm11, %v295_v12, 0.0 }
  0x67   :  { %315 = vst [vmem:[#allocation9 + $0x18] sm:$0xff] %v307_v14 }
  0x68   :  { %410 = shalt.err (!%p407_p0)
}
  0x69   :  { %325 = dma.vmem_to_hbm [thread:$0]  %s323_s24, 512, %s564_s3, [#allocation6]  }
  0x6a   :  { %423 = dma.done.wait [#allocation6], 512  }
  0x6b   :  { %424 = vsyncadd [#allocation6], 4294966784 }
  0x6c   :  { %329 = vsyncpa [#allocation5], 1 }
  0x6d   :  { %330 = vsyncpa [#allocation8], 1 }
  0x6e   :  { %331 = vsyncpa [#allocation6], 1 }

</bundles_post_ra>
